<compile_context>
chip_gen: v7x
topology: tpu7x:2x2x1
jax: 0.10.0
libtpu: 0.0.40
codegen_flags: <defaults>
</compile_context>

<pallas_src>
import jax
import jax.numpy as jnp
from jax.experimental import pallas as pl
from jax.experimental.pallas import tpu as pltpu


_LANE = 128        # TPU vreg lane width
_MAX_COLS = 512    # cap the lane-dense slab width (4 vregs wide)


# ----------------------------------------------------------------------------
# Kernel: elementwise Shapley-style text-modality decomposition (VPU path)
# ----------------------------------------------------------------------------
def modality_text_kernel(avt_ref, at_ref, vt_ref, av_ref, a_ref, v_ref, t_ref,
                         out_ref):
    third = jnp.float32(1.0 / 3.0)
    sixth = jnp.float32(1.0 / 6.0)
    AVT = avt_ref[...].astype(jnp.float32)
    AT = at_ref[...].astype(jnp.float32)
    VT = vt_ref[...].astype(jnp.float32)
    AV = av_ref[...].astype(jnp.float32)
    A = a_ref[...].astype(jnp.float32)
    V = v_ref[...].astype(jnp.float32)
    T = t_ref[...].astype(jnp.float32)
    out = third * (AVT - AV) + sixth * (VT - V + AT - A) + third * T
    out_ref[...] = out.astype(out_ref.dtype)


# ----------------------------------------------------------------------------
# Wrapper: lane-dense reshape + (optional) batch grid
# ----------------------------------------------------------------------------
def _lane_dense_2d(shape):
    """Pick a (rows, cols) factorization with cols a multiple of 128 if possible."""
    n = 1
    for d in shape:
        n *= d
    if n % _LANE == 0:
        cols = _LANE
        while cols * 2 <= _MAX_COLS and n % (cols * 2) == 0:
            cols *= 2
        return n // cols, cols
    # Fallback: keep the original trailing dim (block covers the full dim, so
    # the (8,128) divisibility rule is still satisfied).
    cols = shape[-1] if len(shape) else 1
    return n // cols, cols


def modality_text(AVT, AT, VT, AV, A, V, T, *, row_tile=512):
    shape, dtype = AVT.shape, AVT.dtype
    rows, cols = _lane_dense_2d(shape)
    args = [x.reshape(rows, cols) for x in (AVT, AT, VT, AV, A, V, T)]

    # Tile the row axis only when it is large and evenly divisible; otherwise a
    # single full-array block (no pipelining overhead for tiny inputs).
    if rows > row_tile and rows % row_tile == 0:
        tb = row_tile          # multiple of 8 -> valid sublane tile
    else:
        tb = rows              # full first dim -> always valid
    grid = (rows // tb,)
    spec = pl.BlockSpec((tb, cols), lambda i: (i, 0))

    out = pl.pallas_call(
        modality_text_kernel,
        out_shape=jax.ShapeDtypeStruct((rows, cols), dtype),
        grid_spec=pltpu.PrefetchScalarGridSpec(
            num_scalar_prefetch=0,
            grid=grid,
            in_specs=[spec] * 7,
            out_specs=spec,
        ),
        compiler_params=pltpu.CompilerParams(
            dimension_semantics=("parallel",)),
    )(*args)
    return out.reshape(shape)


# ----------------------------------------------------------------------------
# Driver
# ----------------------------------------------------------------------------
if __name__ == "__main__":
    # Logit-shaped inputs, as produced by the AGM trainer's 7 padded net passes.
    B, C = 8, 16

    key = jax.random.PRNGKey(0)
    ks = jax.random.split(key, 7)
    AVT, AT, VT, AV, A, V, T = (
        jax.random.normal(k, (B, C), jnp.float32) for k in ks
    )

    fn = jax.jit(modality_text)
    out = fn(AVT, AT, VT, AV, A, V, T)
    jax.block_until_ready(out)

    # Pure-jnp reference check (same formula as the PyTorch module).
    ref = (1.0 / 3.0) * (AVT - AV) + (1.0 / 6.0) * (VT - V + AT - A) + (1.0 / 3.0) * T
    assert out.shape == (B, C)
    assert jnp.allclose(out, ref, atol=1e-5, rtol=1e-5)

    print("KERNEL_OK")
</pallas_src>

<mosaic_0001>
module attributes {stable_mosaic.version = 11 : i64} {
  func.func @modality_text_kernel(%arg0: i32, %arg1: memref<1x128xf32, #tpu.memory_space<vmem>>, %arg2: memref<1x128xf32, #tpu.memory_space<vmem>>, %arg3: memref<1x128xf32, #tpu.memory_space<vmem>>, %arg4: memref<1x128xf32, #tpu.memory_space<vmem>>, %arg5: memref<1x128xf32, #tpu.memory_space<vmem>>, %arg6: memref<1x128xf32, #tpu.memory_space<vmem>>, %arg7: memref<1x128xf32, #tpu.memory_space<vmem>>, %arg8: memref<1x128xf32, #tpu.memory_space<vmem>>) attributes {dimension_semantics = [#tpu.dimension_semantics<parallel>], iteration_bounds = array<i64: 1>, scalar_prefetch = 0 : i64, scratch_operands = 0 : i64, tpu.core_type = #tpu.core_type<tc>, window_params = [{transform_indices = @transform_0, window_bounds = array<i64: 1, 128>}, {transform_indices = @transform_1, window_bounds = array<i64: 1, 128>}, {transform_indices = @transform_2, window_bounds = array<i64: 1, 128>}, {transform_indices = @transform_3, window_bounds = array<i64: 1, 128>}, {transform_indices = @transform_4, window_bounds = array<i64: 1, 128>}, {transform_indices = @transform_5, window_bounds = array<i64: 1, 128>}, {transform_indices = @transform_6, window_bounds = array<i64: 1, 128>}, {transform_indices = @transform_7, window_bounds = array<i64: 1, 128>}]} {
    %c0 = arith.constant 0 : index
    %c0_0 = arith.constant 0 : index
    %0 = vector.load %arg1[%c0, %c0_0] : memref<1x128xf32, #tpu.memory_space<vmem>>, vector<1x128xf32>
    %c0_1 = arith.constant 0 : index
    %c0_2 = arith.constant 0 : index
    %1 = vector.load %arg2[%c0_1, %c0_2] : memref<1x128xf32, #tpu.memory_space<vmem>>, vector<1x128xf32>
    %c0_3 = arith.constant 0 : index
    %c0_4 = arith.constant 0 : index
    %2 = vector.load %arg3[%c0_3, %c0_4] : memref<1x128xf32, #tpu.memory_space<vmem>>, vector<1x128xf32>
    %c0_5 = arith.constant 0 : index
    %c0_6 = arith.constant 0 : index
    %3 = vector.load %arg4[%c0_5, %c0_6] : memref<1x128xf32, #tpu.memory_space<vmem>>, vector<1x128xf32>
    %c0_7 = arith.constant 0 : index
    %c0_8 = arith.constant 0 : index
    %4 = vector.load %arg5[%c0_7, %c0_8] : memref<1x128xf32, #tpu.memory_space<vmem>>, vector<1x128xf32>
    %c0_9 = arith.constant 0 : index
    %c0_10 = arith.constant 0 : index
    %5 = vector.load %arg6[%c0_9, %c0_10] : memref<1x128xf32, #tpu.memory_space<vmem>>, vector<1x128xf32>
    %c0_11 = arith.constant 0 : index
    %c0_12 = arith.constant 0 : index
    %6 = vector.load %arg7[%c0_11, %c0_12] : memref<1x128xf32, #tpu.memory_space<vmem>>, vector<1x128xf32>
    %7 = arith.subf %0, %3 : vector<1x128xf32>
    %cst = arith.constant 0.333333343 : f32
    %8 = vector.broadcast %cst : f32 to vector<1x128xf32>
    %9 = arith.mulf %8, %7 : vector<1x128xf32>
    %10 = arith.subf %2, %5 : vector<1x128xf32>
    %11 = arith.addf %10, %1 : vector<1x128xf32>
    %12 = arith.subf %11, %4 : vector<1x128xf32>
    %cst_13 = arith.constant 0.166666672 : f32
    %13 = vector.broadcast %cst_13 : f32 to vector<1x128xf32>
    %14 = arith.mulf %13, %12 : vector<1x128xf32>
    %15 = arith.addf %9, %14 : vector<1x128xf32>
    %cst_14 = arith.constant 0.333333343 : f32
    %16 = vector.broadcast %cst_14 : f32 to vector<1x128xf32>
    %17 = arith.mulf %16, %6 : vector<1x128xf32>
    %18 = arith.addf %15, %17 : vector<1x128xf32>
    %c0_15 = arith.constant 0 : index
    %c0_16 = arith.constant 0 : index
    %19 = vector.load %arg8[%c0_15, %c0_16] : memref<1x128xf32, #tpu.memory_space<vmem>>, vector<1x128xf32>
    tpu.vector_store %arg8[%c0_15, %c0_16], %18 {strides = array<i32>} : memref<1x128xf32, #tpu.memory_space<vmem>>, vector<1x128xf32>,
    return
  }
  func.func @transform_0(%arg0: i32) -> (i32, i32) {
    %c0_i32 = arith.constant 0 : i32
    %c0_i32_0 = arith.constant 0 : i32
    return %arg0, %c0_i32 : i32, i32
  }
  func.func @transform_1(%arg0: i32) -> (i32, i32) {
    %c0_i32 = arith.constant 0 : i32
    %c0_i32_0 = arith.constant 0 : i32
    return %arg0, %c0_i32 : i32, i32
  }
  func.func @transform_2(%arg0: i32) -> (i32, i32) {
    %c0_i32 = arith.constant 0 : i32
    %c0_i32_0 = arith.constant 0 : i32
    return %arg0, %c0_i32 : i32, i32
  }
  func.func @transform_3(%arg0: i32) -> (i32, i32) {
    %c0_i32 = arith.constant 0 : i32
    %c0_i32_0 = arith.constant 0 : i32
    return %arg0, %c0_i32 : i32, i32
  }
  func.func @transform_4(%arg0: i32) -> (i32, i32) {
    %c0_i32 = arith.constant 0 : i32
    %c0_i32_0 = arith.constant 0 : i32
    return %arg0, %c0_i32 : i32, i32
  }
  func.func @transform_5(%arg0: i32) -> (i32, i32) {
    %c0_i32 = arith.constant 0 : i32
    %c0_i32_0 = arith.constant 0 : i32
    return %arg0, %c0_i32 : i32, i32
  }
  func.func @transform_6(%arg0: i32) -> (i32, i32) {
    %c0_i32 = arith.constant 0 : i32
    %c0_i32_0 = arith.constant 0 : i32
    return %arg0, %c0_i32 : i32, i32
  }
  func.func @transform_7(%arg0: i32) -> (i32, i32) {
    %c0_i32 = arith.constant 0 : i32
    %c0_i32_0 = arith.constant 0 : i32
    return %arg0, %c0_i32 : i32, i32
  }
}

</mosaic_0001>

<bundles_post_ra>
// kernel: modality_text.1
= control target key start
LH: loop header
LB: loop body
LE: loop exit
PB: predicated region body
PF: predicated region fallthrough
CT: control target
= control target key end

     0   :  { %s111_s0 = inlined_call_operand.vmem [shape: f32[1,128], index: 0, kind: input, shape index: {}]   ;;  %s112_s1 = inlined_call_operand.vmem [shape: f32[1,128], index: 1, kind: input, shape index: {}]   ;;  %s113_s2 = inlined_call_operand.vmem [shape: f32[1,128], index: 2, kind: input, shape index: {}]   ;;  %s114_s3 = inlined_call_operand.vmem [shape: f32[1,128], index: 3, kind: input, shape index: {}]   ;;  %s115_s5 = inlined_call_operand.vmem [shape: f32[1,128], index: 5, kind: input, shape index: {}]   ;;  %s116_s4 = inlined_call_operand.vmem [shape: f32[1,128], index: 4, kind: input, shape index: {}]   ;;  %s117_s6 = inlined_call_operand.vmem [shape: f32[1,128], index: 6, kind: input, shape index: {}]   ;;  %s118_s7 = inlined_call_operand.vmem [shape: f32[1,128], index: 7, kind: output, shape index: {}]  }
   0x1   :  { %v26_v0 = vld [vmem:[%s111_s0] sm:$0x1] }
   0x2   :  { %v28_v1 = vld [vmem:[%s113_s2] sm:$0x1] }
   0x3   :  { %v27_v2 = vld [vmem:[%s112_s1] sm:$0x1] }
   0x4   :  { %v29_v3 = vld [vmem:[%s114_s3] sm:$0x1] }
   0x5   :  { %v31_v4 = vld [vmem:[%s115_s5] sm:$0x1]  ;;  %v33_v5 = vsub.f32 %v26_v0, %v29_v3 }
   0x6   :  { %v35_v6 = vsub.f32 %v28_v1, %v31_v4  ;;  %v30_v7 = vld [vmem:[%s116_s4] sm:$0x1] }
   0x7   :  { %v32_v9 = vld [vmem:[%s117_s6] sm:$0x1]  ;;  %v34_v10 = vmul.f32 0.33333334, %v33_v5 }
   0x8   :  { %v36_v8 = vadd.f32 %v35_v6, %v27_v2  ;;  %v40_v13 = vmul.f32 0.33333334, %v32_v9 }
   0xa   :  { %v37_v11 = vsub.f32 %v36_v8, %v30_v7 }
   0xc   :  { %v38_v12 = vmul.f32 0.16666667, %v37_v11 }
   0xe   :  { %v39_v14 = vadd.f32 %v38_v12, %v34_v10 }
  0x10   :  { %v41_v15 = vadd.f32 %v40_v13, %v39_v14 }
  0x12   :  { %42 = vst [vmem:[%s118_s7] sm:$0x1] %v41_v15 }

</bundles_post_ra>
